<compile_context>
chip_gen: v7x
topology: tpu7x:2x2x1
jax: 0.10.0
libtpu: 0.0.40
codegen_flags: <defaults>
</compile_context>

<pallas_src>
import functools

import jax
import jax.numpy as jnp
from jax import lax
from jax.experimental import pallas as pl
from jax.experimental.pallas import tpu as pltpu

_LANES = 128
_SUBLANES = 8
_STRIP_ROWS = 128                      # rows per inner accumulation strip
_TARGET_BLOCK_BYTES = 8 * 1024 * 1024  # ~8 MiB per input block (x2 buffers)


def _num_shards():
    """2 on multi-TensorCore chips (v7x / v4 / v5p), 1 on v5e/v6e."""
    try:
        kind = jax.devices()[0].device_kind.lower()
    except Exception:
        return 2
    single_tc = ("v5e" in kind) or ("v5 lite" in kind) or ("v5lite" in kind) \
        or ("v6" in kind)
    return 1 if single_tc else 2


def _l1_sum_kernel(x_ref, o_ref, *, tile_rows, strip_rows, tiles_per_shard,
                   rows_total):
    """Accumulate per-(sublane, lane) partial sums of |x| into o_ref."""
    c = pl.program_id(0)  # TensorCore shard ("parallel")
    i = pl.program_id(1)  # reduction step within the shard ("arbitrary")
    n_strips = tile_rows // strip_rows

    @pl.when(i == 0)
    def _():
        o_ref[...] = jnp.zeros_like(o_ref)

    t = c * tiles_per_shard + i              # logical tile index (unclamped)
    rows_here = rows_total - t * tile_rows   # valid rows inside this tile

    # Hot path: tile fully in range -> strip loop of vld + abs + VPU adds;
    # no iota/select and no full-tile f32 temp in VMEM.
    @pl.when(rows_here >= tile_rows)
    def _():
        def body(s, acc):
            start = pl.multiple_of(s * strip_rows, strip_rows)
            a = jnp.abs(x_ref[pl.ds(start, strip_rows), :].astype(jnp.float32))
            return acc + jnp.sum(a.reshape(-1, _SUBLANES, _LANES), axis=0)

        acc = lax.fori_loop(0, n_strips, body,
                            jnp.zeros((_SUBLANES, _LANES), jnp.float32))
        o_ref[...] += acc

    # Edge path: partially valid last tile -> mask rows past the logical end
    # (the unfilled rows of the block buffer hold stale VMEM and are zeroed).
    @pl.when(jnp.logical_and(rows_here > 0, rows_here < tile_rows))
    def _():
        def body(s, acc):
            start = pl.multiple_of(s * strip_rows, strip_rows)
            row = start + lax.broadcasted_iota(
                jnp.int32, (strip_rows, _LANES), 0)
            a = jnp.where(
                row < rows_here,
                jnp.abs(x_ref[pl.ds(start, strip_rows), :].astype(jnp.float32)),
                jnp.float32(0.0))
            return acc + jnp.sum(a.reshape(-1, _SUBLANES, _LANES), axis=0)

        acc = lax.fori_loop(0, n_strips, body,
                            jnp.zeros((_SUBLANES, _LANES), jnp.float32))
        o_ref[...] += acc
    # rows_here <= 0 (clamped duplicate tile on a short shard): contributes 0.


def _l1_abs_sum_pallas(x2d, rows_total, itemsize):
    """Sum of |x| over a (rows_total, 128) slab via a streaming Pallas kernel."""
    # Block sizing: ~8 MiB blocks; rows a multiple of 8 (and of the inner
    # strip whenever the slab is big enough).
    target_rows = max(_STRIP_ROWS, _TARGET_BLOCK_BYTES // (_LANES * itemsize))
    max_rows = (rows_total // _SUBLANES) * _SUBLANES
    tile_rows = min(target_rows, max_rows)
    if tile_rows >= _STRIP_ROWS:
        tile_rows = (tile_rows // _STRIP_ROWS) * _STRIP_ROWS
        strip_rows = _STRIP_ROWS
    else:
        strip_rows = tile_rows

    num_tiles = pl.cdiv(rows_total, tile_rows)
    n_split = min(_num_shards(), num_tiles)      # shard across TCs on v7x
    tiles_per_shard = pl.cdiv(num_tiles, n_split)

    kernel = functools.partial(
        _l1_sum_kernel, tile_rows=tile_rows, strip_rows=strip_rows,
        tiles_per_shard=tiles_per_shard, rows_total=rows_total)

    def x_index_map(c, i):
        # Clamp so a short shard never produces an out-of-range block index;
        # the unclamped row count in-kernel zeroes the duplicated tile, and a
        # repeated block index lets the pipeline skip the redundant DMA.
        return (jnp.minimum(c * tiles_per_shard + i, num_tiles - 1), 0)

    block_bytes = tile_rows * _LANES * itemsize
    # 2x double-buffered input + headroom; >= 32 MiB to clear v5e's 16 MiB
    # default, <= 48 MiB to stay comfortably inside v7x's 64 MiB physical.
    vmem_limit = int(min(48 << 20, max(32 << 20, 2 * block_bytes + (12 << 20))))

    partials = pl.pallas_call(
        kernel,
        out_shape=jax.ShapeDtypeStruct((n_split, _SUBLANES, _LANES),
                                       jnp.float32),
        grid_spec=pltpu.PrefetchScalarGridSpec(
            num_scalar_prefetch=0,
            grid=(n_split, tiles_per_shard),
            in_specs=[pl.BlockSpec((tile_rows, _LANES), x_index_map)],
            out_specs=pl.BlockSpec((None, _SUBLANES, _LANES),
                                   lambda c, i: (c, 0, 0)),
        ),
        compiler_params=pltpu.CompilerParams(
            dimension_semantics=("parallel", "arbitrary"),
            vmem_limit_bytes=vmem_limit,
        ),
        cost_estimate=pl.CostEstimate(
            flops=2 * rows_total * _LANES,
            transcendentals=0,
            bytes_accessed=rows_total * _LANES * itemsize
            + n_split * _SUBLANES * _LANES * 4,
        ),
    )(x2d)
    return jnp.sum(partials)


def l1_sparse_head(x, weight=1.0):
    """Pallas equivalent of L1SparseHead.forward. Returns {'loss': scalar}."""
    n = x.size
    flat = x.reshape(-1)               # layout-only, no extra HBM pass
    itemsize = jnp.dtype(x.dtype).itemsize

    rows_total = n // _LANES
    main = rows_total * _LANES
    rem = n - main

    # Lane-ragged tail (< 128 elements): tiny plain-JAX reduction.
    tail_sum = (jnp.sum(jnp.abs(flat[main:].astype(jnp.float32)))
                if rem else jnp.float32(0.0))

    if rows_total < _SUBLANES:
        # Tiny input: not worth a kernel launch.
        head_sum = (jnp.sum(jnp.abs(flat[:main].astype(jnp.float32)))
                    if main else jnp.float32(0.0))
        total = head_sum + tail_sum
    else:
        # rem == 0: pure layout reshape (no slice, no extra HBM copy).
        # rem != 0: prefix slice may materialize one copy (rare for CNN acts).
        # TODO(synk): absorb the <128-element lane tail in-kernel to avoid the
        # prefix-slice copy when n % 128 != 0.
        x2d = (flat if rem == 0 else flat[:main]).reshape(rows_total, _LANES)
        total = _l1_abs_sum_pallas(x2d, rows_total, itemsize) + tail_sum

    # mean(|x|) * weight — finalized in the wrapper (weight not baked in).
    loss = (total / n) * weight
    return {"loss": loss}


if __name__ == "__main__":
    key = jax.random.PRNGKey(0)
    # NCHW activations, small synthetic shape.
    x = jax.random.normal(key, (2, 4, 16, 16), dtype=jnp.float32)

    out = l1_sparse_head(x, weight=1.0)
    loss = jax.block_until_ready(out["loss"])

    # Cross-check against plain JAX reference.
    ref = jnp.mean(jnp.abs(x)) * 1.0
    assert jnp.allclose(loss, ref, rtol=1e-5, atol=1e-6), (loss, ref)

    print("KERNEL_OK")
</pallas_src>

<mosaic_0001>
module attributes {stable_mosaic.version = 11 : i64} {
  func.func @_l1_sum_kernel(%arg0: i32, %arg1: i32, %arg2: memref<16x128xf32, #tpu.memory_space<vmem>>, %arg3: memref<1x8x128xf32, #tpu.memory_space<vmem>>) attributes {dimension_semantics = [#tpu.dimension_semantics<parallel>, #tpu.dimension_semantics<arbitrary>], iteration_bounds = array<i64: 1, 1>, scalar_prefetch = 0 : i64, scratch_operands = 0 : i64, tpu.core_type = #tpu.core_type<tc>, window_params = [{transform_indices = @transform_0, window_bounds = array<i64: 16, 128>}, {transform_indices = @transform_1, window_bounds = array<i64: 1, 8, 128>}]} {
    %c0_i32 = arith.constant 0 : i32
    %0 = arith.cmpi eq, %arg1, %c0_i32 : i32
    %1 = arith.extui %0 : i1 to i32
    %c0_i32_0 = arith.constant 0 : i32
    %2 = arith.cmpi ne, %1, %c0_i32_0 : i32
    scf.if %2 {
      %cst = arith.constant 0.000000e+00 : f32
      %15 = vector.broadcast %cst : f32 to vector<8x128xf32>
      %c0 = arith.constant 0 : index
      %c0_7 = arith.constant 0 : index
      %c0_8 = arith.constant 0 : index
      %16 = vector.load %arg3[%c0, %c0_7, %c0_8] : memref<1x8x128xf32, #tpu.memory_space<vmem>>, vector<1x8x128xf32>
      %17 = vector.shape_cast %16 : vector<1x8x128xf32> to vector<8x128xf32>
      %18 = vector.shape_cast %15 : vector<8x128xf32> to vector<1x8x128xf32>
      tpu.vector_store %arg3[%c0, %c0_7, %c0_8], %18 {strides = array<i32>} : memref<1x8x128xf32, #tpu.memory_space<vmem>>, vector<1x8x128xf32>,
    } else {
    }
    %c1_i32 = arith.constant 1 : i32
    %3 = arith.muli %arg0, %c1_i32 : i32
    %4 = arith.addi %3, %arg1 : i32
    %c16_i32 = arith.constant 16 : i32
    %5 = arith.muli %4, %c16_i32 : i32
    %c16_i32_1 = arith.constant 16 : i32
    %6 = arith.subi %c16_i32_1, %5 : i32
    %c16_i32_2 = arith.constant 16 : i32
    %7 = arith.cmpi sge, %6, %c16_i32_2 : i32
    %8 = arith.extui %7 : i1 to i32
    %c0_i32_3 = arith.constant 0 : i32
    %9 = arith.cmpi ne, %8, %c0_i32_3 : i32
    scf.if %9 {
      %cst = arith.constant 0.000000e+00 : f32
      %15 = vector.broadcast %cst : f32 to vector<8x128xf32>
      %c0_i32_7 = arith.constant 0 : i32
      %c16_i32_8 = arith.constant 16 : i32
      %16 = arith.muli %c0_i32_7, %c16_i32_8 : i32
      %17 = tpu.assume_multiple %16, 16 : i32
      %18 = arith.index_cast %17 : i32 to index
      %c0 = arith.constant 0 : index
      %19 = vector.load %arg2[%18, %c0] : memref<16x128xf32, #tpu.memory_space<vmem>>, vector<16x128xf32>
      %20 = math.absf %19 : vector<16x128xf32>
      %21 = vector.shape_cast %20 : vector<16x128xf32> to vector<2x8x128xf32>
      %cst_9 = arith.constant dense<0.000000e+00> : vector<8x128xf32>
      %22 = vector.multi_reduction <add>, %21, %cst_9 [0] : vector<2x8x128xf32> to vector<8x128xf32>
      %23 = arith.addf %15, %22 : vector<8x128xf32>
      %c1_i32_10 = arith.constant 1 : i32
      %c0_11 = arith.constant 0 : index
      %c0_12 = arith.constant 0 : index
      %c0_13 = arith.constant 0 : index
      %24 = vector.load %arg3[%c0_11, %c0_12, %c0_13] : memref<1x8x128xf32, #tpu.memory_space<vmem>>, vector<1x8x128xf32>
      %25 = vector.shape_cast %24 : vector<1x8x128xf32> to vector<8x128xf32>
      %26 = arith.addf %25, %23 : vector<8x128xf32>
      %c0_14 = arith.constant 0 : index
      %c0_15 = arith.constant 0 : index
      %c0_16 = arith.constant 0 : index
      %27 = vector.load %arg3[%c0_14, %c0_15, %c0_16] : memref<1x8x128xf32, #tpu.memory_space<vmem>>, vector<1x8x128xf32>
      %28 = vector.shape_cast %27 : vector<1x8x128xf32> to vector<8x128xf32>
      %29 = vector.shape_cast %26 : vector<8x128xf32> to vector<1x8x128xf32>
      tpu.vector_store %arg3[%c0_14, %c0_15, %c0_16], %29 {strides = array<i32>} : memref<1x8x128xf32, #tpu.memory_space<vmem>>, vector<1x8x128xf32>,
    } else {
    }
    %c0_i32_4 = arith.constant 0 : i32
    %10 = arith.cmpi sgt, %6, %c0_i32_4 : i32
    %c16_i32_5 = arith.constant 16 : i32
    %11 = arith.cmpi slt, %6, %c16_i32_5 : i32
    %12 = arith.andi %10, %11 : i1
    %13 = arith.extui %12 : i1 to i32
    %c0_i32_6 = arith.constant 0 : i32
    %14 = arith.cmpi ne, %13, %c0_i32_6 : i32
    scf.if %14 {
      %cst = arith.constant 0.000000e+00 : f32
      %15 = vector.broadcast %cst : f32 to vector<8x128xf32>
      %c0_i32_7 = arith.constant 0 : i32
      %c16_i32_8 = arith.constant 16 : i32
      %16 = arith.muli %c0_i32_7, %c16_i32_8 : i32
      %17 = tpu.assume_multiple %16, 16 : i32
      %18 = tpu.iota {dimensions = array<i32: 0>} : vector<16x128xi32>
      %19 = vector.broadcast %17 : i32 to vector<16x128xi32>
      %20 = arith.addi %19, %18 : vector<16x128xi32>
      %21 = vector.broadcast %6 : i32 to vector<16x128xi32>
      %22 = arith.cmpi slt, %20, %21 : vector<16x128xi32>
      %23 = arith.index_cast %17 : i32 to index
      %c0 = arith.constant 0 : index
      %24 = vector.load %arg2[%23, %c0] : memref<16x128xf32, #tpu.memory_space<vmem>>, vector<16x128xf32>
      %25 = math.absf %24 : vector<16x128xf32>
      %cst_9 = arith.constant 0.000000e+00 : f32
      %26 = vector.broadcast %cst_9 : f32 to vector<16x128xf32>
      %27 = arith.select %22, %25, %26 : vector<16x128xi1>, vector<16x128xf32>
      %28 = vector.shape_cast %27 : vector<16x128xf32> to vector<2x8x128xf32>
      %cst_10 = arith.constant dense<0.000000e+00> : vector<8x128xf32>
      %29 = vector.multi_reduction <add>, %28, %cst_10 [0] : vector<2x8x128xf32> to vector<8x128xf32>
      %30 = arith.addf %15, %29 : vector<8x128xf32>
      %c1_i32_11 = arith.constant 1 : i32
      %c0_12 = arith.constant 0 : index
      %c0_13 = arith.constant 0 : index
      %c0_14 = arith.constant 0 : index
      %31 = vector.load %arg3[%c0_12, %c0_13, %c0_14] : memref<1x8x128xf32, #tpu.memory_space<vmem>>, vector<1x8x128xf32>
      %32 = vector.shape_cast %31 : vector<1x8x128xf32> to vector<8x128xf32>
      %33 = arith.addf %32, %30 : vector<8x128xf32>
      %c0_15 = arith.constant 0 : index
      %c0_16 = arith.constant 0 : index
      %c0_17 = arith.constant 0 : index
      %34 = vector.load %arg3[%c0_15, %c0_16, %c0_17] : memref<1x8x128xf32, #tpu.memory_space<vmem>>, vector<1x8x128xf32>
      %35 = vector.shape_cast %34 : vector<1x8x128xf32> to vector<8x128xf32>
      %36 = vector.shape_cast %33 : vector<8x128xf32> to vector<1x8x128xf32>
      tpu.vector_store %arg3[%c0_15, %c0_16, %c0_17], %36 {strides = array<i32>} : memref<1x8x128xf32, #tpu.memory_space<vmem>>, vector<1x8x128xf32>,
    } else {
    }
    return
  }
  func.func @transform_0(%arg0: i32, %arg1: i32) -> (i32, i32) {
    %c1_i32 = arith.constant 1 : i32
    %0 = arith.muli %arg0, %c1_i32 : i32
    %1 = arith.addi %0, %arg1 : i32
    %c0_i32 = arith.constant 0 : i32
    %2 = arith.minsi %1, %c0_i32 : i32
    %c0_i32_0 = arith.constant 0 : i32
    %c0_i32_1 = arith.constant 0 : i32
    return %2, %c0_i32_0 : i32, i32
  }
  func.func @transform_1(%arg0: i32, %arg1: i32) -> (i32, i32, i32) {
    %c0_i32 = arith.constant 0 : i32
    %c0_i32_0 = arith.constant 0 : i32
    %c0_i32_1 = arith.constant 0 : i32
    return %arg0, %c0_i32, %c0_i32_0 : i32, i32, i32
  }
}

</mosaic_0001>

<bundles_post_ra>
// kernel: tpu_custom_call.1
= control target key start
LH: loop header
LB: loop body
LE: loop exit
PB: predicated region body
PF: predicated region fallthrough
CT: control target
= control target key end

     0   :  { %6 = vsyncpa [#allocation3], 0  ;;  %s188_s0 = inlined_call_operand.hbm [shape: f32[16,128], index: 0, kind: input, shape index: {}]   ;;  %s189_s1 = inlined_call_operand.hbm [shape: f32[1,8,128], index: 1, kind: output, shape index: {}]  }
   0x1   :  { %7 = vsyncpa [#allocation4], 0  ;;  %s150_s6 = smov [#allocation2]   ;;  %s102_s10 = scalar_lea.hbm %s188_s0, 256 }
   0x2   :  { %s19_s7 = sshll.u32 %s150_s6, 4  ;;  %p103_p0 = scmp.ne.s32.totalorder %s188_s0, %s102_s10  ;;  %s20_s7 = int_to_ptr.vmem [resolvable:$true] %s19_s7 }
   0x3   :  { %p106_p1 = scmp.lt.u32.totalorder %s102_s10, %s188_s0 }
   0x5   :  { %p108_p2 = pnand %p106_p1, %p103_p0 }
   0x7   :  { %111 = shalt.err (!%p108_p2)
}
   0x8   :  { %s112_s15 = scalar_lea.vmem %s20_s7, 256  ;;  %p117_p4 = scmp.lt.s32.totalorder %s20_s7, %s20_s7 }
   0x9   :  { %p113_p3 = scmp.ne.s32.totalorder %s20_s7, %s112_s15  ;;  %p118_p5 = scmp.lt.s32.totalorder %s112_s15, %s112_s15 }
   0xb   :  { %p119_p6 = por %p118_p5, %p117_p4 }
   0xd   :  { %p120_p7 = pnand %p119_p6, %p113_p3 }
   0xf   :  { %123 = shalt.err (!%p120_p7)
}
  0x10   :  { %s151_s16 = smov 128   ;;  %s152_s17 = smov 8  }
  0x11   :  { %25 = dma.hbm_to_vmem [thread:$0]  %s188_s0, 256, %s20_s7, [#allocation3], %s151_s16, %s151_s16, %s152_s17  }
  0x12   :  { %146 = dma.done.wait [#allocation3], 256  }
  0x13   :  { %147 = vsyncadd [#allocation3], 4294967040  ;;  %v45_v0 = vld [vmem:[#allocation2] sm:$0xff]  ;;  %v46_v1 = vld [vmem:[#allocation2 + $0x8] sm:$0xff]  ;;  %s153_s20 = smov [#allocation5]  }
  0x14   :  { %v47_v2 = vand.u32 2147483647, %v45_v0  ;;  %v48_v3 = vand.u32 2147483647, %v46_v1  ;;  %s86_s21 = sshll.u32 %s153_s20, 4  ;;  %s87_s21 = int_to_ptr.vmem [resolvable:$true] %s86_s21 }
  0x15   :  { %s124_s22 = scalar_lea.vmem %s87_s21, 128  ;;  %p129_p9 = scmp.lt.s32.totalorder %s87_s21, %s87_s21 }
  0x16   :  { %v49_v4 = vadd.f32 %v48_v3, %v47_v2  ;;  %p125_p8 = scmp.ne.s32.totalorder %s87_s21, %s124_s22  ;;  %p130_p10 = scmp.lt.s32.totalorder %s124_s22, %s124_s22 }
  0x18   :  { %53 = vst [vmem:[#allocation5] sm:$0xff] %v49_v4  ;;  %p131_p11 = por %p130_p10, %p129_p9 }
  0x1a   :  { %p132_p12 = pnand %p131_p11, %p125_p8 }
  0x1c   :  { %135 = shalt.err (!%p132_p12)
}
  0x1d   :  { %s136_s24 = scalar_lea.hbm %s189_s1, 128 }
  0x1e   :  { %p137_p13 = scmp.ne.s32.totalorder %s189_s1, %s136_s24  ;;  %p140_p0 = scmp.lt.u32.totalorder %s136_s24, %s189_s1 }
  0x20   :  { %p142_p1 = pnand %p140_p0, %p137_p13 }
  0x22   :  { %145 = shalt.err (!%p142_p1)
}
  0x23   :  { %89 = dma.vmem_to_hbm [thread:$0]  %s87_s21, 128, %s189_s1, [#allocation4]  }
  0x24   :  { %148 = dma.done.wait [#allocation4], 128  }
  0x25   :  { %149 = vsyncadd [#allocation4], 4294967168 }
  0x26   :  { %93 = vsyncpa [#allocation3], 1 }
  0x27   :  { %94 = vsyncpa [#allocation4], 1 }

</bundles_post_ra>
